<compile_context>
chip_gen: v6e
topology: v6e:2x2x1
jax: 0.10.0
libtpu: 0.0.40
codegen_flags: <defaults>
</compile_context>

<pallas_src>
import functools

import jax
import jax.numpy as jnp
from jax import lax
from jax.experimental import pallas as pl
from jax.experimental.pallas import tpu as pltpu


def _bernoulli(p, seed32, draw32, row_off):
    """Sample Bernoulli(p) using a counter-based int32 hash (portable ops only).

    Unique counter per (global row, column, draw index, seed); avalanche mix;
    compare 24 random bits against round(p * 2^24) in integer domain.
    """
    shape = p.shape
    r = lax.broadcasted_iota(jnp.int32, shape, 0) + row_off
    c = lax.broadcasted_iota(jnp.int32, shape, 1)
    x = r * jnp.int32(shape[1]) + c
    x = x * jnp.int32(1664525) + jnp.int32(1013904223)          # LCG scramble
    x = x ^ (seed32 * jnp.int32(668265295) + draw32 * jnp.int32(374761393))
    # Mueller-style avalanche (wrapping int32 arithmetic; logical shift emulated
    # by arithmetic shift + mask).
    x = x ^ ((x >> 16) & jnp.int32(0xFFFF))
    x = x * jnp.int32(0x045D9F3B)
    x = x ^ ((x >> 16) & jnp.int32(0xFFFF))
    x = x * jnp.int32(0x045D9F3B)
    x = x ^ ((x >> 16) & jnp.int32(0xFFFF))
    bits = x & jnp.int32(0x00FFFFFF)                            # 24 uniform bits
    thresh = (p * jnp.float32(1 << 24)).astype(jnp.int32)
    return bits < thresh


def rbm_cdk_kernel(seed_ref, v_ref, w_ref, hb_ref, vb_ref,
                   hpos_ref, vneg_ref, *, k: int):
    """CD-k hot path: bf16 matmuls (MXU), sigmoid (EUP), hash-PRNG Bernoulli (VPU)."""
    tm, n_visible = v_ref.shape
    n_hidden = w_ref.shape[0]

    seed32 = seed_ref[0]
    # Decorrelate PRNG streams across batch tiles via the global row offset.
    row_off = pl.program_id(0) * tm

    w_bf = w_ref[...]                              # already bf16
    v_bf = v_ref[...].astype(jnp.bfloat16)         # binary {0,1} -> exact in bf16

    # Hoist bias broadcasts out of the Gibbs loop (JAX does not CSE broadcasts).
    hb_b = jnp.broadcast_to(hb_ref[...], (tm, n_hidden))
    vb_b = jnp.broadcast_to(vb_ref[...], (tm, n_visible))

    def sample_h(vv, draw):
        # F.linear(v, W.t(), h_bias) == v @ W + h_bias
        act = jnp.dot(vv, w_bf, preferred_element_type=jnp.float32) + hb_b
        p_h = jax.nn.sigmoid(act)
        return _bernoulli(p_h, seed32, draw, row_off).astype(jnp.bfloat16)

    def sample_v(hh, draw):
        # F.linear(h, W, v_bias) == h @ W.T + v_bias
        # Transposed contraction on the MXU — no materialized W.T in VMEM.
        act = lax.dot_general(
            hh, w_bf,
            dimension_numbers=(((1,), (1,)), ((), ())),
            preferred_element_type=jnp.float32) + vb_b
        p_v = jax.nn.sigmoid(act)
        return _bernoulli(p_v, seed32, draw, row_off).astype(jnp.bfloat16)

    # h_pos, _ = sample_h(v)
    h_pos = sample_h(v_bf, jnp.int32(0))

    # v_neg = v.clone(); k Gibbs steps.
    def gibbs_step(step, v_neg):
        h_neg = sample_h(v_neg, 1 + 2 * step)
        return sample_v(h_neg, 2 + 2 * step)

    v_neg = lax.fori_loop(0, k, gibbs_step, v_bf)

    hpos_ref[...] = h_pos.astype(hpos_ref.dtype)
    vneg_ref[...] = v_neg.astype(vneg_ref.dtype)


def rbm_forward(v, W, h_bias, v_bias, *, seed: int = 0, k: int = 1):
    """Returns (h_pos, v_neg) like RBM.forward(v, k)."""
    B, n_visible = v.shape
    n_hidden = W.shape[0]
    assert n_visible == n_hidden, (
        "Reference module's sample_h/sample_v are only shape-consistent when "
        "n_visible == n_hidden.")

    # Batch tile: multiple of 8 sublanes; up to 256 rows to fill the MXU on
    # v6e/v7x (also fine granularity for v5e's 4x128^2 MXU).
    tm = min(256, ((B + 7) // 8) * 8)
    b_pad = ((B + tm - 1) // tm) * tm

    v_f32 = v.astype(jnp.float32)
    if b_pad != B:
        v_f32 = jnp.pad(v_f32, ((0, b_pad - B), (0, 0)))

    w_bf = W.astype(jnp.bfloat16)
    hb = h_bias.reshape(1, n_hidden).astype(jnp.float32)
    vb = v_bias.reshape(1, n_visible).astype(jnp.float32)
    seed_arr = jnp.array([seed], dtype=jnp.int32)

    grid = (b_pad // tm,)
    kernel = functools.partial(rbm_cdk_kernel, k=k)

    # Scoped-VMEM budget: resident bf16 W (x2 margin) + pipelined activation
    # tiles + slack; clamp to [32 MiB, 64 MiB] (raises v5e's 16 MiB default,
    # stays within v7x's 64 MiB physical VMEM).
    est = 2 * n_hidden * n_visible * 2 + 16 * tm * (n_visible + n_hidden) * 4 + (2 << 20)
    vmem_limit = int(min(64 * 1024 * 1024, max(32 * 1024 * 1024, est)))

    h_pos, v_neg = pl.pallas_call(
        kernel,
        grid=grid,
        out_shape=(
            jax.ShapeDtypeStruct((b_pad, n_hidden), jnp.float32),   # h_pos
            jax.ShapeDtypeStruct((b_pad, n_visible), jnp.float32),  # v_neg
        ),
        in_specs=[
            pl.BlockSpec(memory_space=pltpu.MemorySpace.SMEM),       # seed scalar
            pl.BlockSpec((tm, n_visible), lambda i: (i, 0)),         # v (batch-tiled)
            pl.BlockSpec((n_hidden, n_visible), lambda i: (0, 0)),   # W (resident)
            pl.BlockSpec((1, n_hidden), lambda i: (0, 0)),           # h_bias
            pl.BlockSpec((1, n_visible), lambda i: (0, 0)),          # v_bias
        ],
        out_specs=(
            pl.BlockSpec((tm, n_hidden), lambda i: (i, 0)),
            pl.BlockSpec((tm, n_visible), lambda i: (i, 0)),
        ),
        compiler_params=pltpu.CompilerParams(
            dimension_semantics=("parallel",),
            vmem_limit_bytes=vmem_limit,
        ),
    )(seed_arr, v_f32, w_bf, hb, vb)

    if b_pad != B:
        h_pos = h_pos[:B]
        v_neg = v_neg[:B]
    return h_pos, v_neg


if __name__ == "__main__":
    # Module as written requires n_visible == n_hidden (see note above).
    B = 8
    n_visible = 128
    n_hidden = 128
    k = 1

    key = jax.random.PRNGKey(0)
    kw, kv = jax.random.split(key)

    # Deterministic parameter init matching __init__:
    #   W = randn(n_hidden, n_visible) * 0.01, h_bias = 0, v_bias = 0
    W = jax.random.normal(kw, (n_hidden, n_visible), dtype=jnp.float32) * 0.01
    h_bias = jnp.zeros((n_hidden,), dtype=jnp.float32)
    v_bias = jnp.zeros((n_visible,), dtype=jnp.float32)

    # Binary visible input
    v = (jax.random.uniform(kv, (B, n_visible)) > 0.5).astype(jnp.float32)

    h_pos, v_neg = rbm_forward(v, W, h_bias, v_bias, seed=0, k=k)
    jax.block_until_ready((h_pos, v_neg))

    assert h_pos.shape == (B, n_hidden) and v_neg.shape == (B, n_visible)
    assert h_pos.dtype == jnp.float32 and v_neg.dtype == jnp.float32
    # samples must be binary {0,1}
    assert bool(jnp.all((h_pos == 0) | (h_pos == 1)))
    assert bool(jnp.all((v_neg == 0) | (v_neg == 1)))
    # with W ~ 0.01 and zero biases, p ~ 0.5 -> sample means should be near 0.5
    assert 0.2 < float(h_pos.mean()) < 0.8
    assert 0.2 < float(v_neg.mean()) < 0.8

    print("KERNEL_OK")
</pallas_src>

<mosaic_0001>
module attributes {stable_mosaic.version = 11 : i64} {
  func.func @rbm_cdk_kernel(%arg0: i32, %arg1: memref<1xi32, #tpu.memory_space<smem>>, %arg2: memref<8x128xf32, #tpu.memory_space<vmem>>, %arg3: memref<128x128xbf16, #tpu.memory_space<vmem>>, %arg4: memref<1x128xf32, #tpu.memory_space<vmem>>, %arg5: memref<1x128xf32, #tpu.memory_space<vmem>>, %arg6: memref<8x128xf32, #tpu.memory_space<vmem>>, %arg7: memref<8x128xf32, #tpu.memory_space<vmem>>) attributes {dimension_semantics = [#tpu.dimension_semantics<parallel>], iteration_bounds = array<i64: 1>, scalar_prefetch = 0 : i64, scratch_operands = 0 : i64, tpu.core_type = #tpu.core_type<tc>, window_params = [{transform_indices = @transform_0, window_bounds = array<i64: 1>}, {transform_indices = @transform_1, window_bounds = array<i64: 8, 128>}, {pipeline_mode = #tpu.pipeline_mode<synchronous>, transform_indices = @transform_2, window_bounds = array<i64: 128, 128>}, {pipeline_mode = #tpu.pipeline_mode<synchronous>, transform_indices = @transform_3, window_bounds = array<i64: 1, 128>}, {pipeline_mode = #tpu.pipeline_mode<synchronous>, transform_indices = @transform_4, window_bounds = array<i64: 1, 128>}, {transform_indices = @transform_5, window_bounds = array<i64: 8, 128>}, {transform_indices = @transform_6, window_bounds = array<i64: 8, 128>}]} {
    %c0 = arith.constant 0 : index
    %0 = memref.load %arg1[%c0] : memref<1xi32, #tpu.memory_space<smem>>
    %c8_i32 = arith.constant 8 : i32
    %1 = arith.muli %arg0, %c8_i32 : i32
    %c0_0 = arith.constant 0 : index
    %c0_1 = arith.constant 0 : index
    %2 = vector.load %arg3[%c0_0, %c0_1] : memref<128x128xbf16, #tpu.memory_space<vmem>>, vector<128x128xbf16>
    %c0_2 = arith.constant 0 : index
    %c0_3 = arith.constant 0 : index
    %3 = vector.load %arg2[%c0_2, %c0_3] : memref<8x128xf32, #tpu.memory_space<vmem>>, vector<8x128xf32>
    %4 = arith.truncf %3 : vector<8x128xf32> to vector<8x128xbf16>
    %c0_4 = arith.constant 0 : index
    %c0_5 = arith.constant 0 : index
    %5 = vector.load %arg4[%c0_4, %c0_5] : memref<1x128xf32, #tpu.memory_space<vmem>>, vector<1x128xf32>
    %6 = vector.shape_cast %5 : vector<1x128xf32> to vector<1x128xf32>
    %7 = vector.broadcast %6 : vector<1x128xf32> to vector<8x128xf32>
    %c0_6 = arith.constant 0 : index
    %c0_7 = arith.constant 0 : index
    %8 = vector.load %arg5[%c0_6, %c0_7] : memref<1x128xf32, #tpu.memory_space<vmem>>, vector<1x128xf32>
    %9 = vector.shape_cast %8 : vector<1x128xf32> to vector<1x128xf32>
    %10 = vector.broadcast %9 : vector<1x128xf32> to vector<8x128xf32>
    %cst = arith.constant dense<0.000000e+00> : vector<8x128xf32>
    %11 = tpu.matmul %4, %2, %cst {dimension_numbers = #tpu.dot_dimension_numbers<[1], [0], [0], [1], [0, 0, 1, 1], [], []>} : vector<8x128xbf16>, vector<128x128xbf16>, vector<8x128xf32> -> vector<8x128xf32>
    %12 = arith.addf %11, %7 : vector<8x128xf32>
    %13 = arith.negf %12 : vector<8x128xf32>
    %14 = math.exp %13 : vector<8x128xf32>
    %cst_8 = arith.constant 1.000000e+00 : f32
    %15 = vector.broadcast %cst_8 : f32 to vector<8x128xf32>
    %16 = arith.addf %15, %14 : vector<8x128xf32>
    %17 = arith.divf %15, %16 : vector<8x128xf32>
    %18 = tpu.iota {dimensions = array<i32: 0>} : vector<8x128xi32>
    %19 = vector.broadcast %1 : i32 to vector<8x128xi32>
    %20 = arith.addi %18, %19 : vector<8x128xi32>
    %21 = tpu.iota {dimensions = array<i32: 1>} : vector<8x128xi32>
    %c128_i32 = arith.constant 128 : i32
    %22 = vector.broadcast %c128_i32 : i32 to vector<8x128xi32>
    %23 = arith.muli %20, %22 : vector<8x128xi32>
    %24 = arith.addi %23, %21 : vector<8x128xi32>
    %c1664525_i32 = arith.constant 1664525 : i32
    %25 = vector.broadcast %c1664525_i32 : i32 to vector<8x128xi32>
    %26 = arith.muli %24, %25 : vector<8x128xi32>
    %c1013904223_i32 = arith.constant 1013904223 : i32
    %27 = vector.broadcast %c1013904223_i32 : i32 to vector<8x128xi32>
    %28 = arith.addi %26, %27 : vector<8x128xi32>
    %c668265295_i32 = arith.constant 668265295 : i32
    %29 = arith.muli %0, %c668265295_i32 : i32
    %c0_i32 = arith.constant 0 : i32
    %c374761393_i32 = arith.constant 374761393 : i32
    %30 = arith.muli %c0_i32, %c374761393_i32 : i32
    %31 = arith.addi %29, %30 : i32
    %32 = vector.broadcast %31 : i32 to vector<8x128xi32>
    %33 = arith.xori %28, %32 : vector<8x128xi32>
    %c16_i32 = arith.constant 16 : i32
    %34 = vector.broadcast %c16_i32 : i32 to vector<8x128xi32>
    %35 = arith.shrsi %33, %34 : vector<8x128xi32>
    %c65535_i32 = arith.constant 65535 : i32
    %36 = vector.broadcast %c65535_i32 : i32 to vector<8x128xi32>
    %37 = arith.andi %35, %36 : vector<8x128xi32>
    %38 = arith.xori %33, %37 : vector<8x128xi32>
    %c73244475_i32 = arith.constant 73244475 : i32
    %39 = vector.broadcast %c73244475_i32 : i32 to vector<8x128xi32>
    %40 = arith.muli %38, %39 : vector<8x128xi32>
    %c16_i32_9 = arith.constant 16 : i32
    %41 = vector.broadcast %c16_i32_9 : i32 to vector<8x128xi32>
    %42 = arith.shrsi %40, %41 : vector<8x128xi32>
    %c65535_i32_10 = arith.constant 65535 : i32
    %43 = vector.broadcast %c65535_i32_10 : i32 to vector<8x128xi32>
    %44 = arith.andi %42, %43 : vector<8x128xi32>
    %45 = arith.xori %40, %44 : vector<8x128xi32>
    %c73244475_i32_11 = arith.constant 73244475 : i32
    %46 = vector.broadcast %c73244475_i32_11 : i32 to vector<8x128xi32>
    %47 = arith.muli %45, %46 : vector<8x128xi32>
    %c16_i32_12 = arith.constant 16 : i32
    %48 = vector.broadcast %c16_i32_12 : i32 to vector<8x128xi32>
    %49 = arith.shrsi %47, %48 : vector<8x128xi32>
    %c65535_i32_13 = arith.constant 65535 : i32
    %50 = vector.broadcast %c65535_i32_13 : i32 to vector<8x128xi32>
    %51 = arith.andi %49, %50 : vector<8x128xi32>
    %52 = arith.xori %47, %51 : vector<8x128xi32>
    %c16777215_i32 = arith.constant 16777215 : i32
    %53 = vector.broadcast %c16777215_i32 : i32 to vector<8x128xi32>
    %54 = arith.andi %52, %53 : vector<8x128xi32>
    %cst_14 = arith.constant 0x4B800000 : f32
    %55 = vector.broadcast %cst_14 : f32 to vector<8x128xf32>
    %56 = arith.mulf %17, %55 : vector<8x128xf32>
    %57 = arith.fptosi %56 : vector<8x128xf32> to vector<8x128xi32>
    %58 = arith.cmpi slt, %54, %57 : vector<8x128xi32>
    %59 = arith.extui %58 : vector<8x128xi1> to vector<8x128xi32>
    %60 = arith.sitofp %59 : vector<8x128xi32> to vector<8x128xf32>
    %61 = arith.truncf %60 : vector<8x128xf32> to vector<8x128xbf16>
    %c0_i32_15 = arith.constant 0 : i32
    %c2_i32 = arith.constant 2 : i32
    %62 = arith.muli %c2_i32, %c0_i32_15 : i32
    %c1_i32 = arith.constant 1 : i32
    %63 = arith.addi %c1_i32, %62 : i32
    %cst_16 = arith.constant dense<0.000000e+00> : vector<8x128xf32>
    %64 = tpu.matmul %4, %2, %cst_16 {dimension_numbers = #tpu.dot_dimension_numbers<[1], [0], [0], [1], [0, 0, 1, 1], [], []>} : vector<8x128xbf16>, vector<128x128xbf16>, vector<8x128xf32> -> vector<8x128xf32>
    %65 = arith.addf %64, %7 : vector<8x128xf32>
    %66 = arith.negf %65 : vector<8x128xf32>
    %67 = math.exp %66 : vector<8x128xf32>
    %cst_17 = arith.constant 1.000000e+00 : f32
    %68 = vector.broadcast %cst_17 : f32 to vector<8x128xf32>
    %69 = arith.addf %68, %67 : vector<8x128xf32>
    %70 = arith.divf %68, %69 : vector<8x128xf32>
    %71 = tpu.iota {dimensions = array<i32: 0>} : vector<8x128xi32>
    %72 = vector.broadcast %1 : i32 to vector<8x128xi32>
    %73 = arith.addi %71, %72 : vector<8x128xi32>
    %74 = tpu.iota {dimensions = array<i32: 1>} : vector<8x128xi32>
    %c128_i32_18 = arith.constant 128 : i32
    %75 = vector.broadcast %c128_i32_18 : i32 to vector<8x128xi32>
    %76 = arith.muli %73, %75 : vector<8x128xi32>
    %77 = arith.addi %76, %74 : vector<8x128xi32>
    %c1664525_i32_19 = arith.constant 1664525 : i32
    %78 = vector.broadcast %c1664525_i32_19 : i32 to vector<8x128xi32>
    %79 = arith.muli %77, %78 : vector<8x128xi32>
    %c1013904223_i32_20 = arith.constant 1013904223 : i32
    %80 = vector.broadcast %c1013904223_i32_20 : i32 to vector<8x128xi32>
    %81 = arith.addi %79, %80 : vector<8x128xi32>
    %c668265295_i32_21 = arith.constant 668265295 : i32
    %82 = arith.muli %0, %c668265295_i32_21 : i32
    %c374761393_i32_22 = arith.constant 374761393 : i32
    %83 = arith.muli %63, %c374761393_i32_22 : i32
    %84 = arith.addi %82, %83 : i32
    %85 = vector.broadcast %84 : i32 to vector<8x128xi32>
    %86 = arith.xori %81, %85 : vector<8x128xi32>
    %c16_i32_23 = arith.constant 16 : i32
    %87 = vector.broadcast %c16_i32_23 : i32 to vector<8x128xi32>
    %88 = arith.shrsi %86, %87 : vector<8x128xi32>
    %c65535_i32_24 = arith.constant 65535 : i32
    %89 = vector.broadcast %c65535_i32_24 : i32 to vector<8x128xi32>
    %90 = arith.andi %88, %89 : vector<8x128xi32>
    %91 = arith.xori %86, %90 : vector<8x128xi32>
    %c73244475_i32_25 = arith.constant 73244475 : i32
    %92 = vector.broadcast %c73244475_i32_25 : i32 to vector<8x128xi32>
    %93 = arith.muli %91, %92 : vector<8x128xi32>
    %c16_i32_26 = arith.constant 16 : i32
    %94 = vector.broadcast %c16_i32_26 : i32 to vector<8x128xi32>
    %95 = arith.shrsi %93, %94 : vector<8x128xi32>
    %c65535_i32_27 = arith.constant 65535 : i32
    %96 = vector.broadcast %c65535_i32_27 : i32 to vector<8x128xi32>
    %97 = arith.andi %95, %96 : vector<8x128xi32>
    %98 = arith.xori %93, %97 : vector<8x128xi32>
    %c73244475_i32_28 = arith.constant 73244475 : i32
    %99 = vector.broadcast %c73244475_i32_28 : i32 to vector<8x128xi32>
    %100 = arith.muli %98, %99 : vector<8x128xi32>
    %c16_i32_29 = arith.constant 16 : i32
    %101 = vector.broadcast %c16_i32_29 : i32 to vector<8x128xi32>
    %102 = arith.shrsi %100, %101 : vector<8x128xi32>
    %c65535_i32_30 = arith.constant 65535 : i32
    %103 = vector.broadcast %c65535_i32_30 : i32 to vector<8x128xi32>
    %104 = arith.andi %102, %103 : vector<8x128xi32>
    %105 = arith.xori %100, %104 : vector<8x128xi32>
    %c16777215_i32_31 = arith.constant 16777215 : i32
    %106 = vector.broadcast %c16777215_i32_31 : i32 to vector<8x128xi32>
    %107 = arith.andi %105, %106 : vector<8x128xi32>
    %cst_32 = arith.constant 0x4B800000 : f32
    %108 = vector.broadcast %cst_32 : f32 to vector<8x128xf32>
    %109 = arith.mulf %70, %108 : vector<8x128xf32>
    %110 = arith.fptosi %109 : vector<8x128xf32> to vector<8x128xi32>
    %111 = arith.cmpi slt, %107, %110 : vector<8x128xi32>
    %112 = arith.extui %111 : vector<8x128xi1> to vector<8x128xi32>
    %113 = arith.sitofp %112 : vector<8x128xi32> to vector<8x128xf32>
    %114 = arith.truncf %113 : vector<8x128xf32> to vector<8x128xbf16>
    %c2_i32_33 = arith.constant 2 : i32
    %115 = arith.muli %c2_i32_33, %c0_i32_15 : i32
    %c2_i32_34 = arith.constant 2 : i32
    %116 = arith.addi %c2_i32_34, %115 : i32
    %cst_35 = arith.constant dense<0.000000e+00> : vector<8x128xf32>
    %117 = tpu.matmul %114, %2, %cst_35 {dimension_numbers = #tpu.dot_dimension_numbers<[1], [1], [0], [0], [0, 0, 1, 0], [], []>} : vector<8x128xbf16>, vector<128x128xbf16>, vector<8x128xf32> -> vector<8x128xf32>
    %118 = arith.addf %117, %10 : vector<8x128xf32>
    %119 = arith.negf %118 : vector<8x128xf32>
    %120 = math.exp %119 : vector<8x128xf32>
    %cst_36 = arith.constant 1.000000e+00 : f32
    %121 = vector.broadcast %cst_36 : f32 to vector<8x128xf32>
    %122 = arith.addf %121, %120 : vector<8x128xf32>
    %123 = arith.divf %121, %122 : vector<8x128xf32>
    %124 = tpu.iota {dimensions = array<i32: 0>} : vector<8x128xi32>
    %125 = vector.broadcast %1 : i32 to vector<8x128xi32>
    %126 = arith.addi %124, %125 : vector<8x128xi32>
    %127 = tpu.iota {dimensions = array<i32: 1>} : vector<8x128xi32>
    %c128_i32_37 = arith.constant 128 : i32
    %128 = vector.broadcast %c128_i32_37 : i32 to vector<8x128xi32>
    %129 = arith.muli %126, %128 : vector<8x128xi32>
    %130 = arith.addi %129, %127 : vector<8x128xi32>
    %c1664525_i32_38 = arith.constant 1664525 : i32
    %131 = vector.broadcast %c1664525_i32_38 : i32 to vector<8x128xi32>
    %132 = arith.muli %130, %131 : vector<8x128xi32>
    %c1013904223_i32_39 = arith.constant 1013904223 : i32
    %133 = vector.broadcast %c1013904223_i32_39 : i32 to vector<8x128xi32>
    %134 = arith.addi %132, %133 : vector<8x128xi32>
    %c668265295_i32_40 = arith.constant 668265295 : i32
    %135 = arith.muli %0, %c668265295_i32_40 : i32
    %c374761393_i32_41 = arith.constant 374761393 : i32
    %136 = arith.muli %116, %c374761393_i32_41 : i32
    %137 = arith.addi %135, %136 : i32
    %138 = vector.broadcast %137 : i32 to vector<8x128xi32>
    %139 = arith.xori %134, %138 : vector<8x128xi32>
    %c16_i32_42 = arith.constant 16 : i32
    %140 = vector.broadcast %c16_i32_42 : i32 to vector<8x128xi32>
    %141 = arith.shrsi %139, %140 : vector<8x128xi32>
    %c65535_i32_43 = arith.constant 65535 : i32
    %142 = vector.broadcast %c65535_i32_43 : i32 to vector<8x128xi32>
    %143 = arith.andi %141, %142 : vector<8x128xi32>
    %144 = arith.xori %139, %143 : vector<8x128xi32>
    %c73244475_i32_44 = arith.constant 73244475 : i32
    %145 = vector.broadcast %c73244475_i32_44 : i32 to vector<8x128xi32>
    %146 = arith.muli %144, %145 : vector<8x128xi32>
    %c16_i32_45 = arith.constant 16 : i32
    %147 = vector.broadcast %c16_i32_45 : i32 to vector<8x128xi32>
    %148 = arith.shrsi %146, %147 : vector<8x128xi32>
    %c65535_i32_46 = arith.constant 65535 : i32
    %149 = vector.broadcast %c65535_i32_46 : i32 to vector<8x128xi32>
    %150 = arith.andi %148, %149 : vector<8x128xi32>
    %151 = arith.xori %146, %150 : vector<8x128xi32>
    %c73244475_i32_47 = arith.constant 73244475 : i32
    %152 = vector.broadcast %c73244475_i32_47 : i32 to vector<8x128xi32>
    %153 = arith.muli %151, %152 : vector<8x128xi32>
    %c16_i32_48 = arith.constant 16 : i32
    %154 = vector.broadcast %c16_i32_48 : i32 to vector<8x128xi32>
    %155 = arith.shrsi %153, %154 : vector<8x128xi32>
    %c65535_i32_49 = arith.constant 65535 : i32
    %156 = vector.broadcast %c65535_i32_49 : i32 to vector<8x128xi32>
    %157 = arith.andi %155, %156 : vector<8x128xi32>
    %158 = arith.xori %153, %157 : vector<8x128xi32>
    %c16777215_i32_50 = arith.constant 16777215 : i32
    %159 = vector.broadcast %c16777215_i32_50 : i32 to vector<8x128xi32>
    %160 = arith.andi %158, %159 : vector<8x128xi32>
    %cst_51 = arith.constant 0x4B800000 : f32
    %161 = vector.broadcast %cst_51 : f32 to vector<8x128xf32>
    %162 = arith.mulf %123, %161 : vector<8x128xf32>
    %163 = arith.fptosi %162 : vector<8x128xf32> to vector<8x128xi32>
    %164 = arith.cmpi slt, %160, %163 : vector<8x128xi32>
    %165 = arith.extui %164 : vector<8x128xi1> to vector<8x128xi32>
    %166 = arith.sitofp %165 : vector<8x128xi32> to vector<8x128xf32>
    %167 = arith.truncf %166 : vector<8x128xf32> to vector<8x128xbf16>
    %c1_i32_52 = arith.constant 1 : i32
    %168 = arith.extf %61 : vector<8x128xbf16> to vector<8x128xf32>
    %c0_53 = arith.constant 0 : index
    %c0_54 = arith.constant 0 : index
    %169 = vector.load %arg6[%c0_53, %c0_54] : memref<8x128xf32, #tpu.memory_space<vmem>>, vector<8x128xf32>
    tpu.vector_store %arg6[%c0_53, %c0_54], %168 {strides = array<i32>} : memref<8x128xf32, #tpu.memory_space<vmem>>, vector<8x128xf32>,
    %170 = arith.extf %167 : vector<8x128xbf16> to vector<8x128xf32>
    %c0_55 = arith.constant 0 : index
    %c0_56 = arith.constant 0 : index
    %171 = vector.load %arg7[%c0_55, %c0_56] : memref<8x128xf32, #tpu.memory_space<vmem>>, vector<8x128xf32>
    tpu.vector_store %arg7[%c0_55, %c0_56], %170 {strides = array<i32>} : memref<8x128xf32, #tpu.memory_space<vmem>>, vector<8x128xf32>,
    return
  }
  func.func @transform_0(%arg0: i32) -> i32 {
    %c0_i32 = arith.constant 0 : i32
    %c0_i32_0 = arith.constant 0 : i32
    return %c0_i32 : i32
  }
  func.func @transform_1(%arg0: i32) -> (i32, i32) {
    %c0_i32 = arith.constant 0 : i32
    %c0_i32_0 = arith.constant 0 : i32
    return %arg0, %c0_i32 : i32, i32
  }
  func.func @transform_2(%arg0: i32) -> (i32, i32) {
    %c0_i32 = arith.constant 0 : i32
    %c0_i32_0 = arith.constant 0 : i32
    %c0_i32_1 = arith.constant 0 : i32
    return %c0_i32, %c0_i32_0 : i32, i32
  }
  func.func @transform_3(%arg0: i32) -> (i32, i32) {
    %c0_i32 = arith.constant 0 : i32
    %c0_i32_0 = arith.constant 0 : i32
    %c0_i32_1 = arith.constant 0 : i32
    return %c0_i32, %c0_i32_0 : i32, i32
  }
  func.func @transform_4(%arg0: i32) -> (i32, i32) {
    %c0_i32 = arith.constant 0 : i32
    %c0_i32_0 = arith.constant 0 : i32
    %c0_i32_1 = arith.constant 0 : i32
    return %c0_i32, %c0_i32_0 : i32, i32
  }
  func.func @transform_5(%arg0: i32) -> (i32, i32) {
    %c0_i32 = arith.constant 0 : i32
    %c0_i32_0 = arith.constant 0 : i32
    return %arg0, %c0_i32 : i32, i32
  }
  func.func @transform_6(%arg0: i32) -> (i32, i32) {
    %c0_i32 = arith.constant 0 : i32
    %c0_i32_0 = arith.constant 0 : i32
    return %arg0, %c0_i32 : i32, i32
  }
}

</mosaic_0001>

<bundles_post_ra>
// kernel: tpu_custom_call.1
= control target key start
LH: loop header
LB: loop body
LE: loop exit
PB: predicated region body
PF: predicated region fallthrough
CT: control target
= control target key end

     0   :  { %13 = vsyncpa [#allocation4], 0  ;;  %s622_s0 = inlined_call_operand.<no memory space> [shape: s32[1], index: 0, kind: input, shape index: {}]   ;;  %s623_s1 = inlined_call_operand.hbm [shape: f32[8,128], index: 1, kind: input, shape index: {}]   ;;  %s624_s2 = inlined_call_operand.hbm [shape: bf16[128,128], index: 2, kind: input, shape index: {}]   ;;  %s625_s3 = inlined_call_operand.vmem [shape: f32[1,128], index: 3, kind: input, shape index: {}]   ;;  %s626_s4 = inlined_call_operand.vmem [shape: f32[1,128], index: 4, kind: input, shape index: {}]   ;;  %s627_s5 = inlined_call_operand.hbm [shape: f32[8,128], index: 5, kind: output, shape index: {0}]   ;;  %s628_s6 = inlined_call_operand.hbm [shape: f32[8,128], index: 6, kind: output, shape index: {1}]  }
   0x1   :  { %14 = vsyncpa [#allocation7], 0 }
   0x2   :  { %15 = vsyncpa [#allocation5], 0 }
   0x3   :  { %16 = vsyncpa [#allocation10], 0  ;;  %s532_s21 = smov [#allocation3]   ;;  %s533_s23 = smov [#allocation6]  }
   0x4   :  { %s25_s22 = sshll.u32 %s532_s21, 4  ;;  %s34_s24 = sshll.u32 %s533_s23, 4  ;;  %s26_s22 = int_to_ptr.vmem [resolvable:$true] %s25_s22  ;;  %s35_s24 = int_to_ptr.vmem [resolvable:$true] %s34_s24 }
   0x5   :  { %s452_s25 = scalar_lea.vmem %s26_s22, 128  ;;  %p457_p1 = scmp.lt.s32.totalorder %s26_s22, %s26_s22 }
   0x6   :  { %p453_p0 = scmp.ne.s32.totalorder %s26_s22, %s452_s25  ;;  %p458_p2 = scmp.lt.s32.totalorder %s452_s25, %s452_s25 }
   0x8   :  { %p459_p3 = por %p458_p2, %p457_p1 }
   0xa   :  { %p460_p4 = pnand %p459_p3, %p453_p0 }
   0xc   :  { %463 = shalt.err (!%p460_p4)
}
   0xd   :  { %28 = dma.hbm_to_vmem [thread:$0]  %s623_s1, 128, %s26_s22, [#allocation4]  }
   0xe   :  { %s472_s28 = scalar_lea.vmem %s35_s24, 1024  ;;  %p477_p6 = scmp.lt.s32.totalorder %s35_s24, %s35_s24 }
   0xf   :  { %p473_p5 = scmp.ne.s32.totalorder %s35_s24, %s472_s28  ;;  %p478_p7 = scmp.lt.s32.totalorder %s472_s28, %s472_s28 }
  0x11   :  { %p479_p8 = por %p478_p7, %p477_p6 }
  0x13   :  { %p480_p9 = pnand %p479_p8, %p473_p5 }
  0x15   :  { %483 = shalt.err (!%p480_p9)
}
  0x16   :  { %s534_s29 = smov 64   ;;  %s535_s30 = smov 4  }
  0x17   :  { %40 = dma.hbm_to_vmem [thread:$0]  %s624_s2, 1024, %s35_s24, [#allocation7], %s534_s29, %s534_s29, %s535_s30  }
  0x18   :  { %524 = dma.done.wait [#allocation4], 128  }
  0x19   :  { %525 = vsyncadd [#allocation4], 4294967168 }
  0x1a   :  { %526 = dma.done.wait [#allocation7], 1024  }
  0x1b   :  { %527 = vsyncadd [#allocation7], 4294966272  ;;  %v536_v0 = vmov 0.0   ;;  %vm537_vm0 = vmmov 0   ;;  %v428_v1 = vld [vmem:[#allocation6 + $0x38] sm:$0xff]   ;;  %v429_v2 = vld [vmem:[#allocation6 + $0x30] sm:$0xff]   ;;  %v180_v11 = vlaneseq }
  0x1c   :  { %375 = vmatprep.subr.bf16.mxu0 %v536_v0  ;;  %391 = vmatprep.mubr.msk.bf16.mxu0 %vm537_vm0, %v536_v0  ;;  %v430_v3 = vld [vmem:[#allocation6 + $0x28] sm:$0xff]   ;;  %v431_v4 = vld [vmem:[#allocation6 + $0x20] sm:$0xff]   ;;  %v432_v5 = vld [vmem:[#allocation6 + $0x18] sm:$0xff]   ;;  %s603_s9 = smul.u32 668265295, %s622_s0  ;;  %s539_s0 = smov [#allocation8]  }
  0x1d   :  { %395 = vmatprep.subr.bf16.mxu1 %v536_v0  ;;  %411 = vmatprep.mubr.msk.bf16.mxu1 %vm537_vm0, %v536_v0  ;;  %v433_v6 = vld [vmem:[#allocation6 + $0x10] sm:$0xff]   ;;  %v434_v7 = vld [vmem:[#allocation6 + $0x8] sm:$0xff]   ;;  %v435_v8 = vld [vmem:[#allocation6] sm:$0xff]   ;;  %v181_v12 = vshrl.u32 %v180_v11, 7  ;;  %v185_v13 = vand.u32 127, %v180_v11 }
  0x1e   :  { %376 = vmatpush3.bf16.msra.mxu0 %v428_v1  ;;  %396 = vmatpush3.bf16.xpose.msra.mxu1 %v428_v1  ;;  %v70_v9 = vld [vmem:[#allocation3] sm:$0xff]  ;;  %s211_s10 = sadd.s32 374761393, %s603_s9  ;;  %v191_v20 = vstv %s603_s9  ;;  %v538_v54 = vmov 1.0|1.0  }
  0x1f   :  { %377 = vmatprep.subr.bf16.mxu0 %v536_v0  ;;  %397 = vmatprep.subr.bf16.mxu1 %v536_v0  ;;  %v71_v10 = vpack.c.bf16 %v70_v9, %v70_v9  ;;  %v186_v14 = vmul.u32 128, %v181_v12  ;;  %v331_v18 = vld [vmem:[%s625_s3] ss:$0 sm:$0xff]  ;;  %v212_v19 = vstv %s211_s10  ;;  %s307_s3 = sshll.u32 %s539_s0, 4  ;;  %s308_s3 = int_to_ptr.vmem [resolvable:$true] %s307_s3 }
  0x20   :  { %s484_s13 = scalar_lea.vmem %s308_s3, 128  ;;  %p489_p11 = scmp.lt.s32.totalorder %s308_s3, %s308_s3 }
  0x21   :  { %v187_v15 = vadd.s32 %v186_v14, %v185_v13  ;;  %p485_p10 = scmp.ne.s32.totalorder %s308_s3, %s484_s13  ;;  %p490_p12 = scmp.lt.s32.totalorder %s484_s13, %s484_s13 }
  0x22   :  { %378 = vmatpush3.bf16.msra.mxu0 %v429_v2 }
  0x23   :  { %379 = vmatprep.subr.bf16.mxu0 %v536_v0  ;;  %v188_v16 = vmul.u32 1664525, %v187_v15  ;;  %p491_p13 = por %p490_p12, %p489_p11 }
  0x25   :  { %v189_v17 = vadd.s32 1013904223, %v188_v16  ;;  %p492_p0 = pnand %p491_p13, %p485_p10 }
  0x26   :  { %380 = vmatpush3.bf16.msra.mxu0 %v430_v3  ;;  %398 = vmatpush3.bf16.xpose.msra.mxu1 %v429_v2 }
  0x27   :  { %381 = vmatprep.subr.bf16.mxu0 %v536_v0  ;;  %399 = vmatprep.subr.bf16.mxu1 %v536_v0  ;;  %v213_v23 = vxor.u32 %v212_v19, %v189_v17  ;;  %v192_v24 = vxor.u32 %v191_v20, %v189_v17 }
  0x29   :  { %v346_v28 = vshrl.u32 %v213_v23, 16  ;;  %v342_v29 = vshrl.u32 %v192_v24, 16 }
  0x2a   :  { %382 = vmatpush3.bf16.msra.mxu0 %v431_v4 }
  0x2b   :  { %383 = vmatprep.subr.bf16.mxu0 %v536_v0  ;;  %v216_v31 = vxor.u32 %v346_v28, %v213_v23  ;;  %v195_v32 = vxor.u32 %v342_v29, %v192_v24 }
  0x2d   :  { %v217_v33 = vmul.u32 73244475, %v216_v31  ;;  %v196_v34 = vmul.u32 73244475, %v195_v32 }
  0x2e   :  { %384 = vmatpush3.bf16.msra.mxu0 %v432_v5  ;;  %400 = vmatpush3.bf16.xpose.msra.mxu1 %v430_v3 }
  0x2f   :  { %385 = vmatprep.subr.bf16.mxu0 %v536_v0  ;;  %401 = vmatprep.subr.bf16.mxu1 %v536_v0  ;;  %v347_v35 = vshrl.u32 %v217_v33, 16  ;;  %v343_v36 = vshrl.u32 %v196_v34, 16 }
  0x31   :  { %v220_v39 = vxor.u32 %v347_v35, %v217_v33  ;;  %v199_v40 = vxor.u32 %v343_v36, %v196_v34 }
  0x32   :  { %386 = vmatpush3.bf16.msra.mxu0 %v433_v6 }
  0x33   :  { %387 = vmatprep.subr.bf16.mxu0 %v536_v0  ;;  %v221_v41 = vmul.u32 73244475, %v220_v39  ;;  %v200_v42 = vmul.u32 73244475, %v199_v40 }
  0x35   :  { %v348_v43 = vshrl.u32 %v221_v41, 16  ;;  %v344_v44 = vshrl.u32 %v200_v42, 16 }
  0x36   :  { %388 = vmatpush3.bf16.msra.mxu0 %v434_v7  ;;  %402 = vmatpush3.bf16.xpose.msra.mxu1 %v431_v4 }
  0x37   :  { %389 = vmatprep.subr.bf16.mxu0 %v536_v0  ;;  %403 = vmatprep.subr.bf16.mxu1 %v536_v0  ;;  %v224_v45 = vxor.u32 %v348_v43, %v221_v41  ;;  %v203_v46 = vxor.u32 %v344_v44, %v200_v42 }
  0x39   :  { %v225_v50 = vand.u32 16777215, %v224_v45  ;;  %v204_v51 = vand.u32 16777215, %v203_v46 }
  0x3a   :  { %390 = vmatpush3.bf16.msra.mxu0 %v435_v8 }
  0x3d   :  { %392 = vmatmul.mubr.bf16.vlgmr.msra.gmra.mxu0 %v71_v10 }
  0x3e   :  { %404 = vmatpush3.bf16.xpose.msra.mxu1 %v432_v5 }
  0x3f   :  { %405 = vmatprep.subr.bf16.mxu1 %v536_v0 }
  0x46   :  { %406 = vmatpush3.bf16.xpose.msra.mxu1 %v433_v6 }
  0x47   :  { %407 = vmatprep.subr.bf16.mxu1 %v536_v0 }
  0x4e   :  { %408 = vmatpush3.bf16.xpose.msra.mxu1 %v434_v7 }
  0x4f   :  { %409 = vmatprep.subr.bf16.mxu1 %v536_v0 }
  0x56   :  { %410 = vmatpush3.bf16.xpose.msra.mxu1 %v435_v8 }
  0xfd   :  { %v168_v21 = vpop.f32.mrf.mxu0 }
  0xfe   :  { %v169_v22 = vadd.f32 %v331_v18, %v168_v21 }
  0xff   :  { %v393_v25 = vpop.f32.mrf.mxu0 }
 0x100   :  { %v341_v26 = vmul.f32 -1.442695, %v169_v22 }
 0x101   :  { %v171_v27 = vpop.f32.mrf.mxu0 }
 0x102   :  { %436 = vpow2.f32 %v341_v26 }
 0x103   :  { %v394_v30 = vpop.f32.mrf.mxu0 }
 0x10f   :  { %v437_v37 = vpop.eup %436 }
 0x110   :  { %v177_v38 = vadd.f32 1.0, %v437_v37 }
 0x112   :  { %438 = vrcp.f32 %v177_v38 }
 0x11f   :  { %v439_v47 = vpop.eup %438 }
 0x120   :  { %v205_v48 = vmul.f32 16777216.0, %v439_v47 }
 0x122   :  { %v415_v49 = vtrunc.f32 %v205_v48 }
 0x124   :  { %v416_v52 = vcvt.f32.s32 %v415_v49 }
 0x126   :  { %vm226_vm1 = vcmp.lt.s32.totalorder %v225_v50, %v416_v52  ;;  %vm207_vm2 = vcmp.lt.s32.totalorder %v204_v51, %v416_v52 }
 0x127   :  { %vm350_vm3 = vmpackc.low %vm226_vm1, %vm226_vm1  ;;  %v345_v53 = vsel %vm207_vm2, 1.0, %v536_v0 }
 0x128   :  { %412 = vmatmul.mubr.msk.bf16.vlgmr.msra.gmra.mxu1 %vm350_vm3, %v538_v54  ;;  %298 = vst [vmem:[#allocation8] sm:$0xff] %v345_v53 }
 0x129   :  { %495 = shalt.err (!%p492_p0)
}
 0x12a   :  { %310 = dma.vmem_to_hbm [thread:$0]  %s308_s3, 128, %s627_s5, [#allocation5]   ;;  %v332_v55 = vld [vmem:[%s626_s4] ss:$0 sm:$0xff] }
 0x12b   :  { %s276_s16 = sadd.s32 749522786, %s603_s9  ;;  %s540_s4 = smov [#allocation9]  }
 0x12c   :  { %v277_v56 = vstv %s276_s16  ;;  %s317_s5 = sshll.u32 %s540_s4, 4  ;;  %s318_s5 = int_to_ptr.vmem [resolvable:$true] %s317_s5 }
 0x12d   :  { %v278_v59 = vxor.u32 %v277_v56, %v189_v17  ;;  %s504_s19 = scalar_lea.vmem %s318_s5, 128  ;;  %p509_p2 = scmp.lt.s32.totalorder %s318_s5, %s318_s5 }
 0x12e   :  { %p505_p1 = scmp.ne.s32.totalorder %s318_s5, %s504_s19  ;;  %p510_p3 = scmp.lt.s32.totalorder %s504_s19, %s504_s19 }
 0x12f   :  { %v353_v63 = vshrl.u32 %v278_v59, 16 }
 0x130   :  { %p511_p4 = por %p510_p3, %p509_p2 }
 0x131   :  { %v281_v2 = vxor.u32 %v353_v63, %v278_v59 }
 0x132   :  { %p512_p5 = pnand %p511_p4, %p505_p1 }
 0x133   :  { %v282_v3 = vmul.u32 73244475, %v281_v2 }
 0x135   :  { %v354_v4 = vshrl.u32 %v282_v3, 16 }
 0x137   :  { %v285_v7 = vxor.u32 %v354_v4, %v282_v3 }
 0x139   :  { %v286_v8 = vmul.u32 73244475, %v285_v7 }
 0x13b   :  { %v355_v9 = vshrl.u32 %v286_v8, 16 }
 0x13d   :  { %v289_v10 = vxor.u32 %v355_v9, %v286_v8 }
 0x13f   :  { %v290_v13 = vand.u32 16777215, %v289_v10 }
 0x1e8   :  { %v264_v57 = vpop.f32.mrf.mxu1 }
 0x1e9   :  { %v265_v58 = vadd.f32 %v332_v55, %v264_v57 }
 0x1ea   :  { %v413_v60 = vpop.f32.mrf.mxu1 }
 0x1eb   :  { %v352_v61 = vmul.f32 -1.442695, %v265_v58 }
 0x1ec   :  { %v267_v62 = vpop.f32.mrf.mxu1 }
 0x1ed   :  { %440 = vpow2.f32 %v352_v61 }
 0x1ee   :  { %v414_v1 = vpop.f32.mrf.mxu1 }
 0x1fa   :  { %v441_v5 = vpop.eup %440 }
 0x1fb   :  { %v273_v6 = vadd.f32 1.0, %v441_v5 }
 0x1fd   :  { %442 = vrcp.f32 %v273_v6 }
 0x20a   :  { %v443_v11 = vpop.eup %442 }
 0x20b   :  { %v291_v12 = vmul.f32 16777216.0, %v443_v11 }
 0x20d   :  { %v417_v14 = vtrunc.f32 %v291_v12 }
 0x20f   :  { %v418_v15 = vcvt.f32.s32 %v417_v14 }
 0x211   :  { %vm293_vm4 = vcmp.lt.s32.totalorder %v290_v13, %v418_v15 }
 0x212   :  { %v356_v16 = vsel %vm293_vm4, 1.0, %v536_v0 }
 0x213   :  { %300 = vst [vmem:[#allocation9] sm:$0xff] %v356_v16 }
 0x214   :  { %515 = shalt.err (!%p512_p5)
}
 0x215   :  { %320 = dma.vmem_to_hbm [thread:$0]  %s318_s5, 128, %s628_s6, [#allocation10]  }
 0x216   :  { %528 = dma.done.wait [#allocation5], 128  }
 0x217   :  { %529 = vsyncadd [#allocation5], 4294967168 }
 0x218   :  { %530 = dma.done.wait [#allocation10], 128  }
 0x219   :  { %531 = vsyncadd [#allocation10], 4294967168 }
 0x21a   :  { %327 = vsyncpa [#allocation4], 1 }
 0x21b   :  { %328 = vsyncpa [#allocation7], 1 }
 0x21c   :  { %329 = vsyncpa [#allocation5], 1 }
 0x21d   :  { %330 = vsyncpa [#allocation10], 1 }

</bundles_post_ra>
